<compile_context>
chip_gen: v7x
topology: tpu7x:2x2x1
jax: 0.10.0
libtpu: 0.0.40
codegen_flags: <defaults>
</compile_context>

<pallas_src>
import functools

import jax
import jax.numpy as jnp
from jax.experimental import pallas as pl
from jax.experimental.pallas import tpu as pltpu

_BN_EPS = 1e-5


# ---------------------------------------------------------------------------
# Kernel
# ---------------------------------------------------------------------------
def _make_mlp_kernel(num_hidden, out_act):
    """Build a fused MLP kernel for a fixed (static) number of hidden layers.

    Ref layout (per grid step over batch tiles):
      refs = (x_ref, W0, b0, W1, b1, ..., W_out, b_out, o_ref)
      x_ref : (TB, F_in)      batch tile
      W_l   : (F_l, F_{l+1})  pre-transposed (in, out), BN already folded in
      b_l   : (1, F_{l+1})
      o_ref : (TB, F_out)
    """

    def kernel(*refs):
        x_ref, o_ref = refs[0], refs[-1]
        params = refs[1:-1]

        h = x_ref[...].astype(jnp.float32)
        for layer in range(num_hidden + 1):
            w = params[2 * layer][...]
            b = params[2 * layer + 1][...]
            h = jnp.dot(h, w, preferred_element_type=jnp.float32) + b
            if layer < num_hidden or out_act:          # hidden ReLU / optional outAct
                h = jnp.maximum(h, 0.0)
        o_ref[...] = h.astype(o_ref.dtype)

    return kernel


# ---------------------------------------------------------------------------
# Wrapper glue: BN folding + pallas_call
# ---------------------------------------------------------------------------
def _bn_affine(gamma, beta, mean, var):
    """Eval-mode BatchNorm1d as per-feature (scale, shift)."""
    scale = gamma / jnp.sqrt(var + _BN_EPS)
    shift = beta - mean * scale
    return scale, shift


def _fold(W, b, pre_scale, pre_shift, post_scale, post_shift):
    """Fold an input-side affine (startBn) and/or output-side affine (BN after
    the Linear) into the Linear.  W is PyTorch layout (out, in); b is (out,).
    Returns kernel layout: W_eff (in, out), b_eff (1, out)."""
    W = W.astype(jnp.float32)
    b = b.astype(jnp.float32)
    if pre_scale is not None:                      # y = W(s*x + t) + b
        b = b + W @ pre_shift
        W = W * pre_scale[None, :]
    if post_scale is not None:                     # y' = so*y + to
        W = W * post_scale[:, None]
        b = b * post_scale + post_shift
    return W.T, b[None, :]


@functools.partial(
    jax.jit,
    static_argnames=("start_bn", "bn_every_layer", "out_bn", "out_act", "block_b"),
)
def mlp_forward(
    x,
    hidden_w,          # tuple of (out_i, in_i) PyTorch Linear weights
    hidden_b,          # tuple of (out_i,) biases
    out_w,             # (out_size, in_last)
    out_b,             # (out_size,)
    sbn=None,          # (gamma, beta, running_mean, running_var) for startBn
    hidden_bns=None,   # tuple of BN stats tuples, one per hidden layer
    out_bn_stats=None, # BN stats for outBn
    *,
    start_bn=False,
    bn_every_layer=False,
    out_bn=False,
    out_act=False,
    block_b=128,
):
    """Inference forward of the PyTorch MLP module (dropout = identity)."""
    B, _ = x.shape
    out_size = out_w.shape[0]
    num_hidden = len(hidden_w)

    # -- fold eval-mode BatchNorm into the Linears (done once on tiny weights) --
    pre_scale = pre_shift = None
    if start_bn:
        pre_scale, pre_shift = _bn_affine(*sbn)

    eff = []
    for i in range(num_hidden):
        post_scale = post_shift = None
        if bn_every_layer:
            post_scale, post_shift = _bn_affine(*hidden_bns[i])
        eff.append(_fold(hidden_w[i], hidden_b[i],
                         pre_scale, pre_shift, post_scale, post_shift))
        pre_scale = pre_shift = None               # startBn only before 1st layer

    post_scale = post_shift = None
    if out_bn:
        post_scale, post_shift = _bn_affine(*out_bn_stats)
    eff.append(_fold(out_w, out_b, pre_scale, pre_shift, post_scale, post_shift))

    # -- pallas_call: grid over batch tiles, everything else fully resident --
    tb = B if B <= block_b else block_b
    in_size = x.shape[1]

    in_specs = [pl.BlockSpec((tb, in_size), lambda i: (i, 0))]
    flat_params = []
    for W, b in eff:
        fi, fo = W.shape
        in_specs.append(pl.BlockSpec((fi, fo), lambda i: (0, 0)))
        in_specs.append(pl.BlockSpec((1, fo), lambda i: (0, 0)))
        flat_params += [W, b]

    kernel = _make_mlp_kernel(num_hidden, out_act)

    y = pl.pallas_call(
        kernel,
        out_shape=jax.ShapeDtypeStruct((B, out_size), jnp.float32),
        grid=(pl.cdiv(B, tb),),
        in_specs=in_specs,
        out_specs=pl.BlockSpec((tb, out_size), lambda i: (i, 0)),
        compiler_params=pltpu.CompilerParams(
            dimension_semantics=("parallel",)),   # batch tiles are independent
    )(x.astype(jnp.float32), *flat_params)
    return y


# ---------------------------------------------------------------------------
# Pure-JAX reference mirroring the PyTorch forward (eval mode)
# ---------------------------------------------------------------------------
def _mlp_reference(x, hidden_w, hidden_b, out_w, out_b, sbn, hidden_bns,
                   out_bn_stats, start_bn, bn_every_layer, out_bn, out_act):
    def bn(h, stats):
        g, be, m, v = stats
        return (h - m) / jnp.sqrt(v + _BN_EPS) * g + be

    h = x.astype(jnp.float32)
    if start_bn:
        h = bn(h, sbn)
    for i in range(len(hidden_w)):
        h = h @ hidden_w[i].T + hidden_b[i]
        if bn_every_layer:
            h = bn(h, hidden_bns[i])
        h = jnp.maximum(h, 0.0)
    h = h @ out_w.T + out_b
    if out_bn:
        h = bn(h, out_bn_stats)
    if out_act:
        h = jnp.maximum(h, 0.0)
    return h


# ---------------------------------------------------------------------------
# Self-test
# ---------------------------------------------------------------------------
if __name__ == "__main__":
    # MLP(inSize=64, outSize=32, hiddenList=[128, 64],
    #     startBn=True, bnEveryLayer=True, outBn=True, outAct=False, dropout=0.0)
    B, IN, OUT = 16, 64, 32
    HIDDEN = (128, 64)

    key = jax.random.PRNGKey(0)

    def linear_init(key, fan_out, fan_in):
        kw, kb = jax.random.split(key)
        bound = 1.0 / jnp.sqrt(fan_in)
        W = jax.random.uniform(kw, (fan_out, fan_in), minval=-bound, maxval=bound,
                               dtype=jnp.float32)
        b = jax.random.uniform(kb, (fan_out,), minval=-bound, maxval=bound,
                               dtype=jnp.float32)
        return W, b

    def bn_init(key, n):
        k1, k2, k3, k4 = jax.random.split(key, 4)
        gamma = jax.random.uniform(k1, (n,), minval=0.5, maxval=1.5, dtype=jnp.float32)
        beta = 0.1 * jax.random.normal(k2, (n,), dtype=jnp.float32)
        mean = 0.1 * jax.random.normal(k3, (n,), dtype=jnp.float32)
        var = jax.random.uniform(k4, (n,), minval=0.5, maxval=1.5, dtype=jnp.float32)
        return gamma, beta, mean, var

    keys = jax.random.split(key, 16)
    x = jax.random.normal(keys[0], (B, IN), dtype=jnp.float32)

    sizes = (IN,) + HIDDEN
    hidden_w, hidden_b, hidden_bns = [], [], []
    for i, h in enumerate(HIDDEN):
        W, b = linear_init(keys[1 + i], h, sizes[i])
        hidden_w.append(W)
        hidden_b.append(b)
        hidden_bns.append(bn_init(keys[5 + i], h))
    out_w, out_b = linear_init(keys[10], OUT, sizes[-1])
    sbn = bn_init(keys[11], IN)
    out_bn_stats = bn_init(keys[12], OUT)

    flags = dict(start_bn=True, bn_every_layer=True, out_bn=True, out_act=False)

    y = mlp_forward(
        x, tuple(hidden_w), tuple(hidden_b), out_w, out_b,
        sbn=sbn, hidden_bns=tuple(hidden_bns), out_bn_stats=out_bn_stats,
        block_b=8, **flags,
    )
    jax.block_until_ready(y)

    assert y.shape == (B, OUT)

    y_ref = _mlp_reference(x, hidden_w, hidden_b, out_w, out_b, sbn, hidden_bns,
                           out_bn_stats, flags["start_bn"], flags["bn_every_layer"],
                           flags["out_bn"], flags["out_act"])
    assert jnp.allclose(y, y_ref, rtol=1e-4, atol=1e-4), (
        float(jnp.max(jnp.abs(y - y_ref))))

    print("KERNEL_OK")
</pallas_src>

<mosaic_0001>
module attributes {stable_mosaic.version = 11 : i64} {
  func.func @kernel(%arg0: i32, %arg1: memref<8x64xf32, #tpu.memory_space<vmem>>, %arg2: memref<64x128xf32, #tpu.memory_space<vmem>>, %arg3: memref<1x128xf32, #tpu.memory_space<vmem>>, %arg4: memref<128x64xf32, #tpu.memory_space<vmem>>, %arg5: memref<1x64xf32, #tpu.memory_space<vmem>>, %arg6: memref<64x32xf32, #tpu.memory_space<vmem>>, %arg7: memref<1x32xf32, #tpu.memory_space<vmem>>, %arg8: memref<8x32xf32, #tpu.memory_space<vmem>>) attributes {dimension_semantics = [#tpu.dimension_semantics<parallel>], iteration_bounds = array<i64: 2>, scalar_prefetch = 0 : i64, scratch_operands = 0 : i64, tpu.core_type = #tpu.core_type<tc>, window_params = [{transform_indices = @transform_0, window_bounds = array<i64: 8, 64>}, {pipeline_mode = #tpu.pipeline_mode<synchronous>, transform_indices = @transform_1, window_bounds = array<i64: 64, 128>}, {pipeline_mode = #tpu.pipeline_mode<synchronous>, transform_indices = @transform_2, window_bounds = array<i64: 1, 128>}, {pipeline_mode = #tpu.pipeline_mode<synchronous>, transform_indices = @transform_3, window_bounds = array<i64: 128, 64>}, {pipeline_mode = #tpu.pipeline_mode<synchronous>, transform_indices = @transform_4, window_bounds = array<i64: 1, 64>}, {pipeline_mode = #tpu.pipeline_mode<synchronous>, transform_indices = @transform_5, window_bounds = array<i64: 64, 32>}, {pipeline_mode = #tpu.pipeline_mode<synchronous>, transform_indices = @transform_6, window_bounds = array<i64: 1, 32>}, {transform_indices = @transform_7, window_bounds = array<i64: 8, 32>}]} {
    %c0 = arith.constant 0 : index
    %c0_0 = arith.constant 0 : index
    %0 = vector.load %arg1[%c0, %c0_0] : memref<8x64xf32, #tpu.memory_space<vmem>>, vector<8x64xf32>
    %c0_1 = arith.constant 0 : index
    %c0_2 = arith.constant 0 : index
    %1 = vector.load %arg2[%c0_1, %c0_2] : memref<64x128xf32, #tpu.memory_space<vmem>>, vector<64x128xf32>
    %c0_3 = arith.constant 0 : index
    %c0_4 = arith.constant 0 : index
    %2 = vector.load %arg3[%c0_3, %c0_4] : memref<1x128xf32, #tpu.memory_space<vmem>>, vector<1x128xf32>
    %cst = arith.constant dense<0.000000e+00> : vector<8x128xf32>
    %3 = tpu.matmul %0, %1, %cst {dimension_numbers = #tpu.dot_dimension_numbers<[1], [0], [0], [1], [0, 0, 1, 1], [], []>} : vector<8x64xf32>, vector<64x128xf32>, vector<8x128xf32> -> vector<8x128xf32>
    %4 = vector.broadcast %2 : vector<1x128xf32> to vector<8x128xf32>
    %5 = arith.addf %3, %4 : vector<8x128xf32>
    %cst_5 = arith.constant 0.000000e+00 : f32
    %6 = vector.broadcast %cst_5 : f32 to vector<8x128xf32>
    %7 = arith.maximumf %5, %6 : vector<8x128xf32>
    %c0_6 = arith.constant 0 : index
    %c0_7 = arith.constant 0 : index
    %8 = vector.load %arg4[%c0_6, %c0_7] : memref<128x64xf32, #tpu.memory_space<vmem>>, vector<128x64xf32>
    %c0_8 = arith.constant 0 : index
    %c0_9 = arith.constant 0 : index
    %9 = vector.load %arg5[%c0_8, %c0_9] : memref<1x64xf32, #tpu.memory_space<vmem>>, vector<1x64xf32>
    %cst_10 = arith.constant dense<0.000000e+00> : vector<8x64xf32>
    %10 = tpu.matmul %7, %8, %cst_10 {dimension_numbers = #tpu.dot_dimension_numbers<[1], [0], [0], [1], [0, 0, 1, 1], [], []>} : vector<8x128xf32>, vector<128x64xf32>, vector<8x64xf32> -> vector<8x64xf32>
    %11 = vector.broadcast %9 : vector<1x64xf32> to vector<8x64xf32>
    %12 = arith.addf %10, %11 : vector<8x64xf32>
    %cst_11 = arith.constant 0.000000e+00 : f32
    %13 = vector.broadcast %cst_11 : f32 to vector<8x64xf32>
    %14 = arith.maximumf %12, %13 : vector<8x64xf32>
    %c0_12 = arith.constant 0 : index
    %c0_13 = arith.constant 0 : index
    %15 = vector.load %arg6[%c0_12, %c0_13] : memref<64x32xf32, #tpu.memory_space<vmem>>, vector<64x32xf32>
    %c0_14 = arith.constant 0 : index
    %c0_15 = arith.constant 0 : index
    %16 = vector.load %arg7[%c0_14, %c0_15] : memref<1x32xf32, #tpu.memory_space<vmem>>, vector<1x32xf32>
    %cst_16 = arith.constant dense<0.000000e+00> : vector<8x32xf32>
    %17 = tpu.matmul %14, %15, %cst_16 {dimension_numbers = #tpu.dot_dimension_numbers<[1], [0], [0], [1], [0, 0, 1, 1], [], []>} : vector<8x64xf32>, vector<64x32xf32>, vector<8x32xf32> -> vector<8x32xf32>
    %18 = vector.broadcast %16 : vector<1x32xf32> to vector<8x32xf32>
    %19 = arith.addf %17, %18 : vector<8x32xf32>
    %c0_17 = arith.constant 0 : index
    %c0_18 = arith.constant 0 : index
    %20 = vector.load %arg8[%c0_17, %c0_18] : memref<8x32xf32, #tpu.memory_space<vmem>>, vector<8x32xf32>
    tpu.vector_store %arg8[%c0_17, %c0_18], %19 {strides = array<i32>} : memref<8x32xf32, #tpu.memory_space<vmem>>, vector<8x32xf32>,
    return
  }
  func.func @transform_0(%arg0: i32) -> (i32, i32) {
    %c0_i32 = arith.constant 0 : i32
    %c0_i32_0 = arith.constant 0 : i32
    return %arg0, %c0_i32 : i32, i32
  }
  func.func @transform_1(%arg0: i32) -> (i32, i32) {
    %c0_i32 = arith.constant 0 : i32
    %c0_i32_0 = arith.constant 0 : i32
    %c0_i32_1 = arith.constant 0 : i32
    return %c0_i32, %c0_i32_0 : i32, i32
  }
  func.func @transform_2(%arg0: i32) -> (i32, i32) {
    %c0_i32 = arith.constant 0 : i32
    %c0_i32_0 = arith.constant 0 : i32
    %c0_i32_1 = arith.constant 0 : i32
    return %c0_i32, %c0_i32_0 : i32, i32
  }
  func.func @transform_3(%arg0: i32) -> (i32, i32) {
    %c0_i32 = arith.constant 0 : i32
    %c0_i32_0 = arith.constant 0 : i32
    %c0_i32_1 = arith.constant 0 : i32
    return %c0_i32, %c0_i32_0 : i32, i32
  }
  func.func @transform_4(%arg0: i32) -> (i32, i32) {
    %c0_i32 = arith.constant 0 : i32
    %c0_i32_0 = arith.constant 0 : i32
    %c0_i32_1 = arith.constant 0 : i32
    return %c0_i32, %c0_i32_0 : i32, i32
  }
  func.func @transform_5(%arg0: i32) -> (i32, i32) {
    %c0_i32 = arith.constant 0 : i32
    %c0_i32_0 = arith.constant 0 : i32
    %c0_i32_1 = arith.constant 0 : i32
    return %c0_i32, %c0_i32_0 : i32, i32
  }
  func.func @transform_6(%arg0: i32) -> (i32, i32) {
    %c0_i32 = arith.constant 0 : i32
    %c0_i32_0 = arith.constant 0 : i32
    %c0_i32_1 = arith.constant 0 : i32
    return %c0_i32, %c0_i32_0 : i32, i32
  }
  func.func @transform_7(%arg0: i32) -> (i32, i32) {
    %c0_i32 = arith.constant 0 : i32
    %c0_i32_0 = arith.constant 0 : i32
    return %arg0, %c0_i32 : i32, i32
  }
}

</mosaic_0001>

<bundles_post_ra>
// kernel: mlp_forward.1
= control target key start
LH: loop header
LB: loop body
LE: loop exit
PB: predicated region body
PF: predicated region fallthrough
CT: control target
= control target key end

     0   :  { %12 = vsyncpa [#allocation3], 0  ;;  %s1169_s0 = inlined_call_operand.vmem [shape: f32[16,64], index: 0, kind: input, shape index: {}]   ;;  %s1170_s1 = inlined_call_operand.vmem [shape: f32[64,128], index: 1, kind: input, shape index: {}]   ;;  %s1171_s2 = inlined_call_operand.vmem [shape: f32[1,128], index: 2, kind: input, shape index: {}]   ;;  %s1172_s3 = inlined_call_operand.vmem [shape: f32[128,64], index: 3, kind: input, shape index: {}]   ;;  %s1173_s4 = inlined_call_operand.vmem [shape: f32[1,64], index: 4, kind: input, shape index: {}]   ;;  %s1174_s5 = inlined_call_operand.vmem [shape: f32[64,32], index: 5, kind: input, shape index: {}]   ;;  %s1175_s6 = inlined_call_operand.vmem [shape: f32[1,32], index: 6, kind: input, shape index: {}]   ;;  %s1176_s7 = inlined_call_operand.hbm [shape: f32[16,32], index: 7, kind: output, shape index: {}]  }
   0x1   :  { %14 = vsyncpa [#allocation3 + $0x1], 0  ;;  %s943_s24 = smov 0   ;;  %s945_s25 = smov 0  }
   0x2   :  { %s947_s26 = smov 0   ;;  %s949_s27 = smov 0  }
   0x3 LB: > { %s964_s28 = sadd.s32 4294967295, %s897_s27   ;;  %s622_s29 = sadd.s32 4294967294, %s897_s27   ;;  %s897_s27 = sphi %s949_s27, %s1182_s27   ;;  %s893_s26 = sphi %s947_s26, %s1181_s26   ;;  %s889_s25 = sphi %s945_s25, %s1180_s25   ;;  %s885_s24 = sphi %s943_s24, %s1179_s24  }
   0x4   : > { %s968_s30 = sadd.s32 1, %s897_s27   ;;  %s179_s8 = sadd.s32 1, %s893_s26 }
   0x5   : > { %s176_s9 = ssub.s32 %s897_s27, %s968_s30  ;;  %p189_p0 = scmp.ne.s32.totalorder %s893_s26, %s889_s25 }
   0x6   : > { %p177_p1 = scmp.eq.s32.totalorder %s176_s9, 0  ;;  %p190_p2 = scmp.eq.s32.totalorder %s964_s28, 1 }
   0x7   : > { %p195_p3 = scmp.ne.s32.totalorder %s889_s25, %s885_s24  ;;  %p196_p4 = scmp.eq.s32.totalorder %s622_s29, 1 }
   0x8   : > { %s979_s10 = scalar_select %p177_p1, %s893_s26, %s179_s8  }
   0x9   : > { %p981_p5 = por %p190_p2, %p189_p0  ;;  %p985_p6 = por %p196_p4, %p195_p3 }
   0xa   : > { %p625_p7 = scmp.ge.s32.totalorder %s897_s27, 1  ;;  %p239_p8 = scmp.lt.s32.totalorder %s897_s27, 3 }
   0xc   : > { %p240_p9 = pnand %p625_p7, %p239_p8 }
   0xd   : > { %v275_v0 = vld [vmem:[%s1170_s1] sm:$0xff] (!%p240_p9)  ;;  %v276_v1 = vld [vmem:[%s1170_s1 + $0x8] sm:$0xff] (!%p240_p9)  ;;  %v277_v2 = vld [vmem:[%s1170_s1 + $0x10] sm:$0xff] (!%p240_p9)  ;;  %v899_v3 = vmov (!%p240_p9), 0.0|0.0   ;;  %vm900_vm0 = vmmov (!%p240_p9), 0   ;;  %v901_v6 = vmov (!%p240_p9), 0.0  }
   0xe   : > { %243 = sbr.rel (%p240_p9) target bundleno = 691 (0x2b3), region = 48  ;;  %745 = vmatprep.subr.bf16.mxu0 (!%p240_p9), %v899_v3  ;;  %v746_v4 = vpack.c.bf16 (!%p240_p9), %v276_v1, %v275_v0  ;;  %v278_v5 = vld [vmem:[%s1170_s1 + $0x18] sm:$0xff] (!%p240_p9)  ;;  %688 = vmatprep.mubr.msk.f32.mxu0 (!%p240_p9), %vm900_vm0, %v901_v6  ;;  %p270_p10 = scmp.lt.s32.totalorder (!%p240_p9), %s964_s28, 1  ;;  %v365_v7 = vld [vmem:[%s1172_s3] sm:$0xff] (!%p240_p9)  ;;  %v366_v9 = vld [vmem:[%s1172_s3 + $0x8] sm:$0xff] (!%p240_p9)  ;;  %vm290_vm1 = vcmask (!%p240_p9), 523264  }
   0xf   : > { %757 = vmatprep.subr.bf16.mxu1 (!%p240_p9), %v899_v3  ;;  %723 = vmatprep.mubr.msk.f32.mxu1 (!%p240_p9), %vm900_vm0, %v901_v6  ;;  %v749_v8 = vpack.c.bf16 (!%p240_p9), %v278_v5, %v277_v2  ;;  %v367_v10 = vld [vmem:[%s1172_s3 + $0x10] sm:$0xff] (!%p240_p9)  ;;  %v368_v11 = vld [vmem:[%s1172_s3 + $0x18] sm:$0xff] (!%p240_p9)  ;;  %v279_v12 = vld [vmem:[%s1170_s1 + $0x20] sm:$0xff] (!%p240_p9)  ;;  %v758_v14 = vpack.c.bf16 (!%p240_p9), %v366_v9, %v365_v7  ;;  %s267_s16 = sand.u32 (!%p240_p9), 1, %s889_s25   ;;  %s634_s21 = sshll.u32 (!%p240_p9), %s964_s28, 7  ;;  %vm547_vm2 = vcmask (!%p240_p9), 261120  }
  0x10   : > { %747 = vmatpush3.bf16.msra.mxu0 (!%p240_p9), %v746_v4  ;;  %v280_v13 = vld [vmem:[%s1170_s1 + $0x28] sm:$0xff] (!%p240_p9)  ;;  %v761_v15 = vpack.c.bf16 (!%p240_p9), %v368_v11, %v367_v10  ;;  %v369_v17 = vld [vmem:[%s1172_s3 + $0x20] sm:$0xff] (!%p240_p9)  ;;  %v281_v19 = vld [vmem:[%s1170_s1 + $0x30] sm:$0xff] (!%p240_p9)  ;;  %s626_s17 = sshll.u32 (!%p240_p9), %s267_s16, 3  ;;  %s1127_s8 = scalar_lea.hbm (!%p240_p9), %s1176_s7, %s634_s21 }
  0x11   : > { %748 = vmatprep.subr.bf16.mxu0 (!%p240_p9), %v899_v3  ;;  %759 = vmatpush3.bf16.msra.mxu1 (!%p240_p9), %v758_v14  ;;  %v752_v16 = vpack.c.bf16 (!%p240_p9), %v280_v13, %v279_v12  ;;  %v370_v18 = vld [vmem:[%s1172_s3 + $0x28] sm:$0xff] (!%p240_p9)  ;;  %v282_v20 = vld [vmem:[%s1170_s1 + $0x38] sm:$0xff] (!%p240_p9)  ;;  %v371_v23 = vld [vmem:[%s1172_s3 + $0x30] sm:$0xff] (!%p240_p9)  ;;  %s550_s9 = scalar_lea.sflag (!%p240_p9), [#allocation3], %s267_s16 }
  0x12   : > { %760 = vmatprep.subr.bf16.mxu1 (!%p240_p9), %v899_v3  ;;  %v764_v21 = vpack.c.bf16 (!%p240_p9), %v370_v18, %v369_v17  ;;  %v755_v22 = vpack.c.bf16 (!%p240_p9), %v282_v20, %v281_v19  ;;  %v372_v24 = vld [vmem:[%s1172_s3 + $0x38] sm:$0xff] (!%p240_p9)  ;;  %v373_v27 = vld [vmem:[%s1172_s3 + $0x40] sm:$0xff] (!%p240_p9)  ;;  %v374_v28 = vld [vmem:[%s1172_s3 + $0x48] sm:$0xff] (!%p240_p9) }
  0x13   : > { %v767_v25 = vpack.c.bf16 (!%p240_p9), %v372_v24, %v371_v23  ;;  %v770_v29 = vpack.c.bf16 (!%p240_p9), %v374_v28, %v373_v27  ;;  %v375_v30 = vld [vmem:[%s1172_s3 + $0x50] sm:$0xff] (!%p240_p9)  ;;  %v376_v31 = vld [vmem:[%s1172_s3 + $0x58] sm:$0xff] (!%p240_p9)  ;;  %v377_v33 = vld [vmem:[%s1172_s3 + $0x60] sm:$0xff] (!%p240_p9) }
  0x14   : > { %750 = vmatpush3.bf16.msra.mxu0 (!%p240_p9), %v749_v8  ;;  %v773_v32 = vpack.c.bf16 (!%p240_p9), %v376_v31, %v375_v30  ;;  %v378_v34 = vld [vmem:[%s1172_s3 + $0x68] sm:$0xff] (!%p240_p9)  ;;  %v379_v36 = vld [vmem:[%s1172_s3 + $0x70] sm:$0xff] (!%p240_p9)  ;;  %v380_v37 = vld [vmem:[%s1172_s3 + $0x78] sm:$0xff] (!%p240_p9) }
  0x15   : > { %s271_s19 = scalar_select %p270_p10, %s964_s28, 1  ;;  %751 = vmatprep.subr.bf16.mxu0 %v899_v3  ;;  %762 = vmatpush3.bf16.msra.mxu1 %v761_v15  ;;  %v776_v35 = vpack.c.bf16 %v378_v34, %v377_v33  ;;  %v779_v38 = vpack.c.bf16 %v380_v37, %v379_v36  ;;  %v459_v39 = vld [vmem:[%s1174_s5] sm:$0xff]  ;;  %v460_v40 = vld [vmem:[%s1174_s5 + $0x8] sm:$0xff]  ;;  %v461_v41 = vld [vmem:[%s1174_s5 + $0x10] sm:$0xff] }
  0x16   : > { %763 = vmatprep.subr.bf16.mxu1 %v899_v3  ;;  %v782_v42 = vpack.c.bf16 %v460_v40, %v459_v39  ;;  %v462_v43 = vld [vmem:[%s1174_s5 + $0x18] sm:$0xff]  ;;  %v463_v45 = vld [vmem:[%s1174_s5 + $0x20] sm:$0xff]  ;;  %v464_v46 = vld [vmem:[%s1174_s5 + $0x28] sm:$0xff]  ;;  %s902_s28 = smov [#allocation2]  }
  0x17   : > { %s627_s14 = sshll.u32 %s271_s19, 3  ;;  %v785_v44 = vpack.c.bf16 %v462_v43, %v461_v41  ;;  %v788_v47 = vpack.c.bf16 %v464_v46, %v463_v45  ;;  %v628_v48 = vld [vmem:[%s1171_s2] ss:$0 sm:$0xff]  ;;  %v465_v53 = vld [vmem:[%s1174_s5 + $0x30] sm:$0xff]  ;;  %v466_v54 = vld [vmem:[%s1174_s5 + $0x38] sm:$0xff] }
  0x18   : > { %753 = vmatpush3.bf16.msra.mxu0 %v752_v16  ;;  %s273_s19 = scalar_lea.vmem %s1169_s0, %s627_s14  ;;  %v791_v55 = vpack.c.bf16 %v466_v54, %v465_v53  ;;  %v630_v56 = vld [vmem:[%s1173_s4] ss:$0 sm:$0xff]  ;;  %s839_s14 = sshll.u32 %s902_s28, 4  ;;  %s840_s14 = int_to_ptr.vmem [resolvable:$false] %s839_s14 }
  0x19   : > { %754 = vmatprep.subr.bf16.mxu0 %v899_v3  ;;  %765 = vmatpush3.bf16.msra.mxu1 %v764_v21  ;;  %v274_v26 = vld [vmem:[%s273_s19] sm:$0xff]  ;;  %s269_s19 = scalar_lea.vmem [#allocation2], %s626_s17  ;;  %s841_s15 = scalar_lea.vmem %s840_s14, 256 }
  0x1a   : > { %766 = vmatprep.subr.bf16.mxu1 %v899_v3  ;;  %v631_v61 = vld [vmem:[%s1175_s6] ss:$0 sm:$0xff]  ;;  %s563_s22 = sshll.u32 %s269_s19, 4  ;;  %s1129_s22 = int_to_ptr.vmem [resolvable:$true] %s563_s22 }
  0x1b   : > { %s835_s13 = scalar_lea.vmem %s1129_s22, 128  ;;  %p842_p0 = scmp.lt.s32.totalorder %s1129_s22, %s840_s14 }
  0x1c   : > { %756 = vmatpush3.bf16.msra.mxu0 %v755_v22  ;;  %p836_p11 = scmp.ne.s32.totalorder %s1129_s22, %s835_s13  ;;  %p843_p1 = scmp.lt.s32.totalorder %s841_s15, %s835_s13 }
  0x1d   : > { %781 = vmatprep.subr.bf16.mxu0 %v899_v3  ;;  %768 = vmatpush3.bf16.msra.mxu1 %v767_v25 }
  0x1e   : > { %769 = vmatprep.subr.bf16.mxu1 %v899_v3  ;;  %p837_p12 = pnand %p836_p11, %p981_p5  ;;  %p844_p2 = por %p843_p1, %p842_p0 }
  0x1f   : > { %689 = vmatmul.mubr.msk.f32.vlgmr.msra.gmra.mrb[0].mxu0 %vm290_vm1, %v274_v26 }
  0x20   : > { %742 = vmatprep.mubr.msk.f32.mxu0 %vm900_vm0, %v901_v6  ;;  %783 = vmatpush3.bf16.msra.mxu0 %v782_v42  ;;  %p838_p13 = pneg %p837_p12 }
  0x21   : > { %771 = vmatpush3.bf16.msra.mxu1 %v770_v29  ;;  %784 = vmatprep.subr.bf16.mxu0 %v899_v3 }
  0x22   : > { %772 = vmatprep.subr.bf16.mxu1 %v899_v3  ;;  %p845_p3 = pnand %p844_p2, %p838_p13 }
  0x24   : > { %786 = vmatpush3.bf16.msra.mxu0 %v785_v44 }
  0x25   : > { %774 = vmatpush3.bf16.msra.mxu1 %v773_v32  ;;  %787 = vmatprep.subr.bf16.mxu0 %v899_v3 }
  0x26   : > { %775 = vmatprep.subr.bf16.mxu1 %v899_v3 }
  0x28   : > { %789 = vmatpush3.bf16.msra.mxu0 %v788_v47 }
  0x29   : > { %777 = vmatpush3.bf16.msra.mxu1 %v776_v35  ;;  %790 = vmatprep.subr.bf16.mxu0 %v899_v3 }
  0x2a   : > { %778 = vmatprep.subr.bf16.mxu1 %v899_v3 }
  0x2c   : > { %792 = vmatpush3.bf16.msra.mxu0 %v791_v55 }
  0x2d   : > { %780 = vmatpush3.bf16.msra.mxu1 %v779_v38 }
  0xf2   : > { %v360_v49 = vpop.f32.mrb[0].mxu0 }
  0xf3   : > { %v361_v50 = vadd.f32 %v628_v48, %v360_v49  ;;  %v690_v51 = vpop.f32.mrb[1].mxu0 }
  0xf5   : > { %v364_v52 = vmax.f32 %v361_v50, 0.0 }
  0xf7   : > { %724 = vmatmul.mubr.f32.vlgmr.msra.gmra.mrb[0].mxu1 %v364_v52 }
 0x1ca   : > { %v454_v57 = vpop.f32.mrb[0].mxu1 }
 0x1cb   : > { %v455_v58 = vadd.f32 %v630_v56, %v454_v57  ;;  %v725_v59 = vpop.f32.mrb[1].mxu1 }
 0x1cd   : > { %v458_v60 = vmax.f32 %v455_v58, 0.0 }
 0x1cf   : > { %743 = vmatmul.mubr.msk.f32.vlgmr.msra.gmra.mrb[2].mxu0 %vm290_vm1, %v458_v60 }
 0x2a2   : > { %v543_v62 = vpop.f32.mrb[2].mxu0 }
 0x2a3   : > { %v544_v63 = vadd.f32 %v631_v61, %v543_v62  ;;  %v744_v0 = vpop.f32.mrb[3].mxu0 }
 0x2a5   : > { %548 = vst.msk [vmem:[%s269_s19] sm:$0xff] %vm547_vm2, %v544_v63 }
 0x2a6   : > { %848 = shalt.err (!%p845_p3)
}
 0x2a7   : > { %s849_s16 = scalar_lea.hbm %s1127_s8, 128  ;;  %s853_s20 = scalar_lea.hbm %s1176_s7, 256 }
 0x2a8   : > { %p850_p4 = scmp.ne.s32.totalorder %s1127_s8, %s849_s16  ;;  %p854_p9 = scmp.lt.u32.totalorder %s1127_s8, %s1176_s7 }
 0x2a9   : > { %p855_p10 = scmp.lt.u32.totalorder %s853_s20, %s849_s16  ;;  %p857_p12 = scmp.lt.u32.totalorder %s849_s16, %s1127_s8 }
 0x2aa   : > { %p851_p7 = pnand %p850_p4, %p981_p5 }
 0x2ab   : > { %p856_p11 = por %p855_p10, %p854_p9 }
 0x2ac   : > { %p852_p8 = pneg %p851_p7 }
 0x2ad   : > { %p858_p13 = por %p857_p12, %p856_p11 }
 0x2af   : > { %p859_p0 = pnand %p858_p13, %p852_p8 }
 0x2b1   : > { %862 = shalt.err (!%p859_p0)
}
 0x2b2   : > { %793 = dma.vmem_to_hbm [thread:$0]  (%p981_p5), %s1129_s22, 128, %s1127_s8, %s550_s9  }
 0x2b3 PF: > { %p799_p1 = scmp.ge.s32.totalorder %s897_s27, 2  ;;  %s575_s23 = sand.u32 1, %s885_s24  }
 0x2b4   : > { %s576_s29 = scalar_lea.sflag [#allocation3], %s575_s23 }
 0x2b5   : > { %p796_p2 = pnand %p799_p1, %p985_p6 }
 0x2b7   : > { %880 = dma.done.wait (!%p796_p2), %s576_s29, 128  }
 0x2b8   : > { %882 = vsyncadd (!%p796_p2), %s576_s29, 4294967168  ;;  %p17_p3 = scmp.ge.s32.totalorder %s968_s30, 4   ;;  %s1179_s24 = smov %s889_s25 }
 0x2b9   : > { %s1180_s25 = smov %s893_s26  ;;  %s1181_s26 = smov %s979_s10 }
 0x2ba   : > { %s1182_s27 = smov %s968_s30  ;;  %19 = sbr.rel (!%p17_p3) target bundleno = 3 (0x3), region = 83 }
 0x2c1   :  { %581 = vsyncpa [#allocation3], 1 }
 0x2c2   :  { %583 = vsyncpa [#allocation3 + $0x1], 1 }

</bundles_post_ra>
